<compile_context>
chip_gen: v6e
topology: v6e:2x2x1
jax: 0.10.0
libtpu: 0.0.40
codegen_flags: <defaults>
</compile_context>

<pallas_src>
import functools

import jax
import jax.numpy as jnp
from jax.experimental import pallas as pl
from jax.experimental.pallas import tpu as pltpu


def _interpolate_kernel(wgt_ref, lin_ref, slab_ref, out_ref):
    """One grid step = one lane-dense HW tile; neighbors reduced in-register.

    wgt_ref  : SMEM (N,)  f32        -- per-neighbor weight (skip decision only)
    lin_ref  : VMEM (N, 1, TILE_HW)  int32  -- flattened u*V + v per pixel
    slab_ref : VMEM (N, 2C, UV) bf16 -- pre-weighted hi/lo stacked slabs
    out_ref  : VMEM (C, TILE_HW) f32
    """
    n_neighbors = wgt_ref.shape[0]
    two_c, uvn = slab_ref.shape[1], slab_ref.shape[2]
    c = two_c // 2

    # Row iota built once per grid step and reused for every neighbor.
    rows = jax.lax.broadcasted_iota(jnp.int32, (uvn, 1), 0)            # (UV, 1)

    def body(i, acc):
        w = wgt_ref[i]                                                 # SMEM scalar

        def active(a):
            lin_i = lin_ref[i]                                         # (1, TILE_HW)
            # One-hot gather matrix; 0/1 are exact in bf16.
            onehot = (rows == lin_i).astype(jnp.bfloat16)              # (UV, TILE_HW)
            # Single stacked matmul: rows 0..C-1 are the bf16-hi slab, rows
            # C..2C-1 the bf16-lo residual -> summing the halves reproduces
            # the f32 gather to ~2^-17 relative error.
            g2 = jnp.dot(slab_ref[i], onehot,
                         preferred_element_type=jnp.float32)           # (2C, TILE_HW)
            return a + g2[:c, :] + g2[c:, :]

        # Mirrors `if wgt[i] == 0: continue` -- skips the one-hot build and the
        # MXU work entirely (and blocks NaN/Inf from zero-weight views).
        return jax.lax.cond(w != 0.0, active, lambda a: a, acc)

    acc0 = jnp.zeros(out_ref.shape, jnp.float32)
    out_ref[...] = jax.lax.fori_loop(0, n_neighbors, body, acc0, unroll=True)


def _round_up(x, m):
    return ((x + m - 1) // m) * m


def _pick_tile_hw(hw, uv):
    """Lane-aligned HW tile, bounded by the (UV, tile) one-hot VMEM footprint
    (generation-aware) and split so both v7x TensorCores get grid steps."""
    try:
        vmem_bytes = int(pltpu.get_tpu_info().vmem_capacity_bytes)
    except Exception:  # interpret mode / no TPU info available
        vmem_bytes = 64 * 1024 * 1024  # conservative (v7x per-TC)
    # (UV, tile_hw) bf16 one-hot per neighbor (transient inside the unrolled
    # loop) plus double-buffered lin/out blocks; stay well inside the default
    # scoped-VMEM window on every generation.
    onehot_budget = max(vmem_bytes // 16, 512 * 1024)
    cap = (onehot_budget // (2 * uv)) // 256 * 256
    cap = max(256, min(2048, cap))          # 256-multiple -> v6e/v7x MXU aligned
    if hw > cap:
        return cap
    if hw >= 256:
        # Small problem: force >= 2 grid steps so both v7x TCs are used.
        return _round_up((hw + 1) // 2, 128)
    return _round_up(max(hw, 1), 128)


def interpolate_forward(data, pixel, cam_xyz, neighbors, uv_map, eps=1e-6):
    """JAX/Pallas equivalent of Interpolate.forward (rbf=None branch)."""
    del eps  # stored but unused by the original forward
    S, T, U, V, C = data.shape
    N = neighbors.shape[0]
    H, W = pixel.shape[0], pixel.shape[1]
    HW, UV = H * W, U * V

    # ---- bilinear-style weights (rbf is None branch); tiny, plain-JAX glue ----
    nb_f = neighbors.astype(jnp.float32)
    tmp = cam_xyz[None, :2] - nb_f                        # expand - neighbors
    tmp = jnp.abs(tmp[:, 0] * tmp[:, 1])[::-1]            # abs(prod).flip(-1)
    tmp = jnp.where(jnp.abs(tmp) <= 1e-6, 0.0, tmp)
    wgt = tmp / jnp.sum(tmp)                              # unguarded, matches spec
    wgt = jnp.where(jnp.abs(wgt) <= 1e-6, 0.0, wgt).astype(jnp.float32)

    # ---- uv_map is a user-supplied callable in the original module ----
    uv = uv_map(pixel, cam_xyz, neighbors)                # (N, H, W, 2) int32

    # ---- tile-invariant work hoisted out of the kernel ----------------------
    # Gather only the N selected camera views, apply the weight, split into
    # bf16 hi/lo and stack on the channel axis -> (N, 2C, UV) bf16 (a few KB).
    # The full light field never enters VMEM.
    data_flat = data.reshape(S * T, UV, C)                              # (S*T, UV, C)
    nidx = (neighbors[:, 0] * T + neighbors[:, 1]).astype(jnp.int32)    # (N,)
    sel = jnp.take(data_flat, nidx, axis=0)                             # (N, UV, C)
    slab = wgt[:, None, None] * jnp.transpose(sel, (0, 2, 1))           # (N, C, UV) f32
    hi = slab.astype(jnp.bfloat16)
    lo = (slab - hi.astype(jnp.float32)).astype(jnp.bfloat16)
    slab2 = jnp.concatenate([hi, lo], axis=1)                           # (N, 2C, UV)

    lin = (uv[..., 0] * V + uv[..., 1]).reshape(N, 1, HW).astype(jnp.int32)

    # ---- tiling: lane-dense HW tiles, padded tail for non-divisible HW ------
    tile_hw = _pick_tile_hw(HW, UV)
    num_tiles = -(-HW // tile_hw)
    padded_hw = num_tiles * tile_hw
    if padded_hw != HW:
        lin = jnp.pad(lin, ((0, 0), (0, 0), (0, padded_hw - HW)))

    grid_spec = pltpu.PrefetchScalarGridSpec(
        num_scalar_prefetch=1,      # wgt lands in SMEM
        grid=(num_tiles,),          # parallel over HW tiles (both TCs on v7x)
        in_specs=[
            pl.BlockSpec((N, 1, tile_hw), lambda h, wgt: (0, 0, h)),
            # tiny pre-weighted slabs, constant block index -> fetched once
            pl.BlockSpec((N, 2 * C, UV), lambda h, wgt: (0, 0, 0)),
        ],
        out_specs=pl.BlockSpec((C, tile_hw), lambda h, wgt: (0, h)),
    )

    out_chw = pl.pallas_call(
        _interpolate_kernel,
        out_shape=jax.ShapeDtypeStruct((C, padded_hw), jnp.float32),
        grid_spec=grid_spec,
        compiler_params=pltpu.CompilerParams(
            dimension_semantics=("parallel",)),
    )(wgt, lin, slab2)

    out_chw = out_chw[:, :HW]

    # PyTorch does a *raw* .reshape(3, H, W) of the (HW, 3) gather; transpose
    # the lane-dense (C, HW) kernel output back to (HW, C) first so the raw
    # reshape reproduces the exact element ordering.
    return out_chw.T.reshape(C, H, W)


def synthetic_uv_map(pixel, cam_xyz, neighbors, U=16, V=16):
    """Deterministic stand-in for the user-provided uv_map callable.

    Returns integer (u, v) indices into the (U, V) dims of `data`,
    shape (N, H, W, 2)."""
    del cam_xyz
    px = pixel.astype(jnp.int32)                          # (H, W, 2)
    offs = neighbors.astype(jnp.int32)                    # (N, 2)
    uv = px[None, :, :, :] + offs[:, None, None, :]
    uv = uv % jnp.array([U, V], dtype=jnp.int32)
    return uv.astype(jnp.int32)


def reference_forward(data, pixel, cam_xyz, neighbors, uv_map):
    """Plain-JAX mirror of the PyTorch forward (for verification)."""
    H, W = pixel.shape[0], pixel.shape[1]
    nb_f = neighbors.astype(jnp.float32)
    tmp = cam_xyz[None, :2] - nb_f
    tmp = jnp.abs(tmp[:, 0] * tmp[:, 1])[::-1]
    tmp = jnp.where(jnp.abs(tmp) <= 1e-6, 0.0, tmp)
    wgt = tmp / jnp.sum(tmp)
    wgt = jnp.where(jnp.abs(wgt) <= 1e-6, 0.0, wgt)
    uv = uv_map(pixel, cam_xyz, neighbors)
    rgb = jnp.zeros((3, H, W), jnp.float32)
    for i in range(neighbors.shape[0]):
        g = data[neighbors[i, 0], neighbors[i, 1],
                 uv[i, :, :, 0].reshape(-1), uv[i, :, :, 1].reshape(-1)]  # (HW,3)
        rgb = rgb + wgt[i] * g.reshape(3, H, W)
    return rgb


if __name__ == "__main__":
    key = jax.random.PRNGKey(0)
    S, T, U, V = 4, 4, 16, 16          # camera grid x per-view image grid
    H, W, N = 16, 16, 4                # output pixels, number of neighbors

    # deterministic "parameters": the light-field data held by the module
    data = jax.random.uniform(key, (S, T, U, V, 3), dtype=jnp.float32)

    # forward inputs
    yy, xx = jnp.meshgrid(jnp.arange(H), jnp.arange(W), indexing="ij")
    pixel = jnp.stack([yy, xx], axis=-1).astype(jnp.float32)      # (H, W, 2)
    # cam_xyz chosen so two neighbor weights are exactly zero (exercises the
    # `if wgt[i] == 0: continue` path / the in-kernel lax.cond skip).
    cam_xyz = jnp.array([1.0, 2.6, 0.5], dtype=jnp.float32)       # (3,)
    neighbors = jnp.array([[1, 2], [1, 3], [2, 2], [2, 3]], dtype=jnp.int32)

    uv_map = functools.partial(synthetic_uv_map, U=U, V=V)

    rgb = interpolate_forward(data, pixel, cam_xyz, neighbors, uv_map)
    rgb = jax.block_until_ready(rgb)

    ref = reference_forward(data, pixel, cam_xyz, neighbors, uv_map)
    assert rgb.shape == (3, H, W), rgb.shape
    assert jnp.allclose(rgb, ref, atol=1e-5, rtol=1e-5), float(
        jnp.max(jnp.abs(rgb - ref)))
    print("KERNEL_OK")
</pallas_src>

<mosaic_0001>
module attributes {stable_mosaic.version = 11 : i64} {
  func.func @_interpolate_kernel(%arg0: i32, %arg1: memref<4xf32, #tpu.memory_space<smem>>, %arg2: memref<4x1x128xi32, #tpu.memory_space<vmem>>, %arg3: memref<4x6x256xbf16, #tpu.memory_space<vmem>>, %arg4: memref<3x128xf32, #tpu.memory_space<vmem>>) attributes {dimension_semantics = [#tpu.dimension_semantics<parallel>], iteration_bounds = array<i64: 2>, scalar_prefetch = 1 : i64, scratch_operands = 0 : i64, tpu.core_type = #tpu.core_type<tc>, window_params = [{transform_indices = @transform_0, window_bounds = array<i64: 4, 1, 128>}, {pipeline_mode = #tpu.pipeline_mode<synchronous>, transform_indices = @transform_1, window_bounds = array<i64: 4, 6, 256>}, {transform_indices = @transform_2, window_bounds = array<i64: 3, 128>}]} {
    %0 = tpu.iota {dimensions = array<i32: 0>} : vector<256x1xi32>
    %cst = arith.constant 0.000000e+00 : f32
    %1 = vector.broadcast %cst : f32 to vector<3x128xf32>
    %c0_i32 = arith.constant 0 : i32
    %2 = arith.index_cast %c0_i32 : i32 to index
    %3 = memref.load %arg1[%2] : memref<4xf32, #tpu.memory_space<smem>>
    %cst_0 = arith.constant 0.000000e+00 : f32
    %4 = arith.cmpf one, %3, %cst_0 : f32
    %5 = arith.extui %4 : i1 to i32
    %c0_i32_1 = arith.constant 0 : i32
    %6 = arith.cmpi ne, %5, %c0_i32_1 : i32
    %7 = scf.if %6 -> (vector<3x128xf32>) {
      %27 = arith.index_cast %c0_i32 : i32 to index
      %c0_9 = arith.constant 0 : index
      %c0_10 = arith.constant 0 : index
      %28 = vector.load %arg2[%27, %c0_9, %c0_10] : memref<4x1x128xi32, #tpu.memory_space<vmem>>, vector<1x1x128xi32>
      %29 = vector.shape_cast %28 : vector<1x1x128xi32> to vector<1x128xi32>
      %30 = vector.broadcast %0 : vector<256x1xi32> to vector<256x128xi32>
      %31 = vector.broadcast %29 : vector<1x128xi32> to vector<256x128xi32>
      %32 = arith.cmpi eq, %30, %31 : vector<256x128xi32>
      %33 = arith.extui %32 : vector<256x128xi1> to vector<256x128xi32>
      %34 = arith.sitofp %33 : vector<256x128xi32> to vector<256x128xf32>
      %35 = arith.truncf %34 : vector<256x128xf32> to vector<256x128xbf16>
      %36 = arith.index_cast %c0_i32 : i32 to index
      %c0_11 = arith.constant 0 : index
      %c0_12 = arith.constant 0 : index
      %37 = vector.load %arg3[%36, %c0_11, %c0_12] : memref<4x6x256xbf16, #tpu.memory_space<vmem>>, vector<1x6x256xbf16>
      %38 = vector.shape_cast %37 : vector<1x6x256xbf16> to vector<6x256xbf16>
      %cst_13 = arith.constant dense<0.000000e+00> : vector<6x128xf32>
      %39 = tpu.matmul %38, %35, %cst_13 {dimension_numbers = #tpu.dot_dimension_numbers<[1], [0], [0], [1], [0, 0, 1, 1], [], []>} : vector<6x256xbf16>, vector<256x128xbf16>, vector<6x128xf32> -> vector<6x128xf32>
      %40 = vector.extract_strided_slice %39 {offsets = [0, 0], sizes = [3, 128], strides = [1, 1]} : vector<6x128xf32> to vector<3x128xf32>
      %41 = arith.addf %1, %40 : vector<3x128xf32>
      %42 = vector.extract_strided_slice %39 {offsets = [3, 0], sizes = [3, 128], strides = [1, 1]} : vector<6x128xf32> to vector<3x128xf32>
      %43 = arith.addf %41, %42 : vector<3x128xf32>
      scf.yield %43 : vector<3x128xf32>
    } else {
      scf.yield %1 : vector<3x128xf32>
    }
    %c1_i32 = arith.constant 1 : i32
    %8 = arith.index_cast %c1_i32 : i32 to index
    %9 = memref.load %arg1[%8] : memref<4xf32, #tpu.memory_space<smem>>
    %cst_2 = arith.constant 0.000000e+00 : f32
    %10 = arith.cmpf one, %9, %cst_2 : f32
    %11 = arith.extui %10 : i1 to i32
    %c0_i32_3 = arith.constant 0 : i32
    %12 = arith.cmpi ne, %11, %c0_i32_3 : i32
    %13 = scf.if %12 -> (vector<3x128xf32>) {
      %27 = arith.index_cast %c1_i32 : i32 to index
      %c0_9 = arith.constant 0 : index
      %c0_10 = arith.constant 0 : index
      %28 = vector.load %arg2[%27, %c0_9, %c0_10] : memref<4x1x128xi32, #tpu.memory_space<vmem>>, vector<1x1x128xi32>
      %29 = vector.shape_cast %28 : vector<1x1x128xi32> to vector<1x128xi32>
      %30 = vector.broadcast %0 : vector<256x1xi32> to vector<256x128xi32>
      %31 = vector.broadcast %29 : vector<1x128xi32> to vector<256x128xi32>
      %32 = arith.cmpi eq, %30, %31 : vector<256x128xi32>
      %33 = arith.extui %32 : vector<256x128xi1> to vector<256x128xi32>
      %34 = arith.sitofp %33 : vector<256x128xi32> to vector<256x128xf32>
      %35 = arith.truncf %34 : vector<256x128xf32> to vector<256x128xbf16>
      %36 = arith.index_cast %c1_i32 : i32 to index
      %c0_11 = arith.constant 0 : index
      %c0_12 = arith.constant 0 : index
      %37 = vector.load %arg3[%36, %c0_11, %c0_12] : memref<4x6x256xbf16, #tpu.memory_space<vmem>>, vector<1x6x256xbf16>
      %38 = vector.shape_cast %37 : vector<1x6x256xbf16> to vector<6x256xbf16>
      %cst_13 = arith.constant dense<0.000000e+00> : vector<6x128xf32>
      %39 = tpu.matmul %38, %35, %cst_13 {dimension_numbers = #tpu.dot_dimension_numbers<[1], [0], [0], [1], [0, 0, 1, 1], [], []>} : vector<6x256xbf16>, vector<256x128xbf16>, vector<6x128xf32> -> vector<6x128xf32>
      %40 = vector.extract_strided_slice %39 {offsets = [0, 0], sizes = [3, 128], strides = [1, 1]} : vector<6x128xf32> to vector<3x128xf32>
      %41 = arith.addf %7, %40 : vector<3x128xf32>
      %42 = vector.extract_strided_slice %39 {offsets = [3, 0], sizes = [3, 128], strides = [1, 1]} : vector<6x128xf32> to vector<3x128xf32>
      %43 = arith.addf %41, %42 : vector<3x128xf32>
      scf.yield %43 : vector<3x128xf32>
    } else {
      scf.yield %7 : vector<3x128xf32>
    }
    %c2_i32 = arith.constant 2 : i32
    %14 = arith.index_cast %c2_i32 : i32 to index
    %15 = memref.load %arg1[%14] : memref<4xf32, #tpu.memory_space<smem>>
    %cst_4 = arith.constant 0.000000e+00 : f32
    %16 = arith.cmpf one, %15, %cst_4 : f32
    %17 = arith.extui %16 : i1 to i32
    %c0_i32_5 = arith.constant 0 : i32
    %18 = arith.cmpi ne, %17, %c0_i32_5 : i32
    %19 = scf.if %18 -> (vector<3x128xf32>) {
      %27 = arith.index_cast %c2_i32 : i32 to index
      %c0_9 = arith.constant 0 : index
      %c0_10 = arith.constant 0 : index
      %28 = vector.load %arg2[%27, %c0_9, %c0_10] : memref<4x1x128xi32, #tpu.memory_space<vmem>>, vector<1x1x128xi32>
      %29 = vector.shape_cast %28 : vector<1x1x128xi32> to vector<1x128xi32>
      %30 = vector.broadcast %0 : vector<256x1xi32> to vector<256x128xi32>
      %31 = vector.broadcast %29 : vector<1x128xi32> to vector<256x128xi32>
      %32 = arith.cmpi eq, %30, %31 : vector<256x128xi32>
      %33 = arith.extui %32 : vector<256x128xi1> to vector<256x128xi32>
      %34 = arith.sitofp %33 : vector<256x128xi32> to vector<256x128xf32>
      %35 = arith.truncf %34 : vector<256x128xf32> to vector<256x128xbf16>
      %36 = arith.index_cast %c2_i32 : i32 to index
      %c0_11 = arith.constant 0 : index
      %c0_12 = arith.constant 0 : index
      %37 = vector.load %arg3[%36, %c0_11, %c0_12] : memref<4x6x256xbf16, #tpu.memory_space<vmem>>, vector<1x6x256xbf16>
      %38 = vector.shape_cast %37 : vector<1x6x256xbf16> to vector<6x256xbf16>
      %cst_13 = arith.constant dense<0.000000e+00> : vector<6x128xf32>
      %39 = tpu.matmul %38, %35, %cst_13 {dimension_numbers = #tpu.dot_dimension_numbers<[1], [0], [0], [1], [0, 0, 1, 1], [], []>} : vector<6x256xbf16>, vector<256x128xbf16>, vector<6x128xf32> -> vector<6x128xf32>
      %40 = vector.extract_strided_slice %39 {offsets = [0, 0], sizes = [3, 128], strides = [1, 1]} : vector<6x128xf32> to vector<3x128xf32>
      %41 = arith.addf %13, %40 : vector<3x128xf32>
      %42 = vector.extract_strided_slice %39 {offsets = [3, 0], sizes = [3, 128], strides = [1, 1]} : vector<6x128xf32> to vector<3x128xf32>
      %43 = arith.addf %41, %42 : vector<3x128xf32>
      scf.yield %43 : vector<3x128xf32>
    } else {
      scf.yield %13 : vector<3x128xf32>
    }
    %c3_i32 = arith.constant 3 : i32
    %20 = arith.index_cast %c3_i32 : i32 to index
    %21 = memref.load %arg1[%20] : memref<4xf32, #tpu.memory_space<smem>>
    %cst_6 = arith.constant 0.000000e+00 : f32
    %22 = arith.cmpf one, %21, %cst_6 : f32
    %23 = arith.extui %22 : i1 to i32
    %c0_i32_7 = arith.constant 0 : i32
    %24 = arith.cmpi ne, %23, %c0_i32_7 : i32
    %25 = scf.if %24 -> (vector<3x128xf32>) {
      %27 = arith.index_cast %c3_i32 : i32 to index
      %c0_9 = arith.constant 0 : index
      %c0_10 = arith.constant 0 : index
      %28 = vector.load %arg2[%27, %c0_9, %c0_10] : memref<4x1x128xi32, #tpu.memory_space<vmem>>, vector<1x1x128xi32>
      %29 = vector.shape_cast %28 : vector<1x1x128xi32> to vector<1x128xi32>
      %30 = vector.broadcast %0 : vector<256x1xi32> to vector<256x128xi32>
      %31 = vector.broadcast %29 : vector<1x128xi32> to vector<256x128xi32>
      %32 = arith.cmpi eq, %30, %31 : vector<256x128xi32>
      %33 = arith.extui %32 : vector<256x128xi1> to vector<256x128xi32>
      %34 = arith.sitofp %33 : vector<256x128xi32> to vector<256x128xf32>
      %35 = arith.truncf %34 : vector<256x128xf32> to vector<256x128xbf16>
      %36 = arith.index_cast %c3_i32 : i32 to index
      %c0_11 = arith.constant 0 : index
      %c0_12 = arith.constant 0 : index
      %37 = vector.load %arg3[%36, %c0_11, %c0_12] : memref<4x6x256xbf16, #tpu.memory_space<vmem>>, vector<1x6x256xbf16>
      %38 = vector.shape_cast %37 : vector<1x6x256xbf16> to vector<6x256xbf16>
      %cst_13 = arith.constant dense<0.000000e+00> : vector<6x128xf32>
      %39 = tpu.matmul %38, %35, %cst_13 {dimension_numbers = #tpu.dot_dimension_numbers<[1], [0], [0], [1], [0, 0, 1, 1], [], []>} : vector<6x256xbf16>, vector<256x128xbf16>, vector<6x128xf32> -> vector<6x128xf32>
      %40 = vector.extract_strided_slice %39 {offsets = [0, 0], sizes = [3, 128], strides = [1, 1]} : vector<6x128xf32> to vector<3x128xf32>
      %41 = arith.addf %19, %40 : vector<3x128xf32>
      %42 = vector.extract_strided_slice %39 {offsets = [3, 0], sizes = [3, 128], strides = [1, 1]} : vector<6x128xf32> to vector<3x128xf32>
      %43 = arith.addf %41, %42 : vector<3x128xf32>
      scf.yield %43 : vector<3x128xf32>
    } else {
      scf.yield %19 : vector<3x128xf32>
    }
    %c4_i32 = arith.constant 4 : i32
    %c0 = arith.constant 0 : index
    %c0_8 = arith.constant 0 : index
    %26 = vector.load %arg4[%c0, %c0_8] : memref<3x128xf32, #tpu.memory_space<vmem>>, vector<3x128xf32>
    tpu.vector_store %arg4[%c0, %c0_8], %25 {strides = array<i32>} : memref<3x128xf32, #tpu.memory_space<vmem>>, vector<3x128xf32>,
    return
  }
  func.func @transform_0(%arg0: i32, %arg1: memref<4xf32, #tpu.memory_space<smem>>) -> (i32, i32, i32) {
    %c0_i32 = arith.constant 0 : i32
    %c0_i32_0 = arith.constant 0 : i32
    %c0_i32_1 = arith.constant 0 : i32
    return %c0_i32, %c0_i32_0, %arg0 : i32, i32, i32
  }
  func.func @transform_1(%arg0: i32, %arg1: memref<4xf32, #tpu.memory_space<smem>>) -> (i32, i32, i32) {
    %c0_i32 = arith.constant 0 : i32
    %c0_i32_0 = arith.constant 0 : i32
    %c0_i32_1 = arith.constant 0 : i32
    %c0_i32_2 = arith.constant 0 : i32
    return %c0_i32, %c0_i32_0, %c0_i32_1 : i32, i32, i32
  }
  func.func @transform_2(%arg0: i32, %arg1: memref<4xf32, #tpu.memory_space<smem>>) -> (i32, i32) {
    %c0_i32 = arith.constant 0 : i32
    %c0_i32_0 = arith.constant 0 : i32
    return %c0_i32, %arg0 : i32, i32
  }
}

</mosaic_0001>

<bundles_post_ra>
// kernel: tpu_custom_call.1
= control target key start
LH: loop header
LB: loop body
LE: loop exit
PB: predicated region body
PF: predicated region fallthrough
CT: control target
= control target key end

     0   :  { %s2202_s0 = inlined_call_operand.vmem [shape: f32[4], index: 0, kind: input, shape index: {}]   ;;  %s2203_s1 = inlined_call_operand.vmem [shape: s32[4,1,256], index: 1, kind: input, shape index: {}]   ;;  %s2204_s2 = inlined_call_operand.vmem [shape: bf16[4,6,256], index: 2, kind: input, shape index: {}]   ;;  %s2205_s3 = inlined_call_operand.hbm [shape: f32[3,256], index: 3, kind: output, shape index: {}]  }
   0x1   :  { %s8_s14 = sshll.u32 %s2202_s0, 4  ;;  %s9_s14 = int_to_ptr.vmem [resolvable:$true] %s8_s14 }
   0x2   :  { %s1518_s15 = scalar_lea.vmem %s9_s14, 16  ;;  %p1523_p1 = scmp.lt.s32.totalorder %s9_s14, %s9_s14 }
   0x3   :  { %p1519_p0 = scmp.ne.s32.totalorder %s9_s14, %s1518_s15  ;;  %p1524_p2 = scmp.lt.s32.totalorder %s1518_s15, %s1518_s15 }
   0x5   :  { %p1525_p3 = por %p1524_p2, %p1523_p1 }
   0x7   :  { %p1526_p4 = pnand %p1525_p3, %p1519_p0 }
   0x9   :  { %1529 = shalt.err (!%p1526_p4)  }
   0xa   :  { %s1626_s16 = smov [#allocation3]  }
   0xb   :  { %11 = dma.vmem_to_smem %s9_s14, 16, %s1626_s16, [#allocation2] }
   0xc   :  { %1588 = dma.done.wait [#allocation2], 16 }
   0xd   :  { %1589 = vsyncadd [#allocation2], 4294967280 }
   0xe   :  { %13 = sfence }
   0xf   :  { %14 = vsyncpa [#allocation6], 0 }
  0x10   :  { %16 = vsyncpa [#allocation6 + $0x1], 0  ;;  %s1655_s17 = smov 0   ;;  %s1657_s18 = smov 0  }
  0x11   :  { %s1659_s0 = smov 0   ;;  %s1661_s19 = smov 0  }
  0x12 LB: > { %s1033_s20 = sadd.s32 4294967295, %s1608_s19   ;;  %s1034_s21 = sadd.s32 4294967294, %s1608_s19   ;;  %s1608_s19 = sphi %s1661_s19, %s2211_s19   ;;  %s1604_s0 = sphi %s1659_s0, %s2210_s0   ;;  %s1600_s18 = sphi %s1657_s18, %s2209_s18   ;;  %s1596_s17 = sphi %s1655_s17, %s2208_s17  }
  0x13   : > { %s1678_s22 = sadd.s32 1, %s1608_s19   ;;  %s29_s23 = sadd.s32 1, %s1604_s0 }
  0x14   : > { %s26_s24 = ssub.s32 %s1608_s19, %s1678_s22  ;;  %p36_p5 = scmp.ne.s32.totalorder %s1604_s0, %s1600_s18 }
  0x15   : > { %p27_p6 = scmp.eq.s32.totalorder %s26_s24, 0  ;;  %p37_p7 = scmp.eq.s32.totalorder %s1608_s19, 0 }
  0x16   : > { %p87_p8 = scmp.eq.s32.totalorder %s1033_s20, 1  ;;  %p92_p9 = scmp.ne.s32.totalorder %s1600_s18, %s1596_s17 }
  0x17   : > { %s1691_s25 = scalar_select %p27_p6, %s1604_s0, %s29_s23  }
  0x18   : > { %p38_p10 = por %p37_p7, %p36_p5  ;;  %p1693_p11 = por %p87_p8, %p36_p5 }
  0x19   : > { %p93_p12 = scmp.eq.s32.totalorder %s1034_s21, 1  ;;  %p1036_p0 = scmp.ge.s32.totalorder %s1608_s19, 2 }
  0x1b   : > { %p1697_p13 = por %p93_p12, %p92_p9  ;;  %112 = sbr.rel (%p1036_p0) target bundleno = 38 (0x26), region = 20 }
  0x20   : > { %115 = sbr.rel (!%p38_p10) target bundleno = 38 (0x26), region = 24  ;;  %s117_s28 = sand.u32 (%p38_p10), 1, %s1604_s0  }
  0x21   : > { %s120_s4 = scalar_lea.vmem (%p38_p10), %s2203_s1, %s1608_s19  ;;  %s1037_s5 = sshll.u32 (%p38_p10), %s117_s28, 2 }
  0x22   : > { %v137_v0 = vld [vmem:[%s120_s4] sm:$0x1] (%p38_p10)  ;;  %v139_v1 = vld [vmem:[%s120_s4 + $0x2] sm:$0x1] (%p38_p10)  ;;  %v141_v2 = vld [vmem:[%s120_s4 + $0x4] sm:$0x1] (%p38_p10) }
  0x23   : > { %v143_v3 = vld [vmem:[%s120_s4 + $0x6] sm:$0x1] (%p38_p10)  ;;  %s119_s6 = scalar_lea.vmem (%p38_p10), [#allocation4], %s1037_s5 }
  0x24   : > { %138 = vst [vmem:[%s119_s6] sm:$0x1] (%p38_p10), %v137_v0  ;;  %140 = vst [vmem:[%s119_s6 + $0x1] sm:$0x1] (%p38_p10), %v139_v1 }
  0x25   : > { %142 = vst [vmem:[%s119_s6 + $0x2] sm:$0x1] %v141_v2  ;;  %144 = vst [vmem:[%s119_s6 + $0x3] sm:$0x1] %v143_v3 }
  0x26 PF: > { %p1038_p1 = scmp.ge.s32.totalorder %s1608_s19, 1  ;;  %p167_p2 = scmp.lt.s32.totalorder %s1608_s19, 3 }
  0x28   : > { %p168_p3 = pnand %p1038_p1, %p167_p2 }
  0x29   : > { %s174_s7 = sand.u32 (!%p168_p3), 1, %s1600_s18   ;;  %s1712_s8 = sld [smem:[#allocation3]] (!%p168_p3) }
  0x2a   : > { %171 = sbr.rel (%p168_p3) target bundleno = 1045 (0x415), region = 58  ;;  %s1716_s9 = sshll.u32 (!%p168_p3), %s174_s7, 2 }
  0x2b   : > { %s1815_s10 = scalar_lea.vmem (!%p168_p3), [#allocation4], %s1716_s9  ;;  %s194_s11 = scalar_lea.vmem (!%p168_p3), [#allocation5], %s1716_s9 }
  0x2f   : > { %v196_v4 = vlaneseq  ;;  %p230_p4 = scmp.ne.f32.partialorder %s1712_s8, 0.0  ;;  %v1818_v37 = vmov 0  }
  0x30   : > { %v1823_v38 = vld [vmem:[%s1815_s10] ss:$0 sm:$0xff] (%p230_p4)  ;;  %v1627_v39 = vmov (%p230_p4), 1.0|1.0  }
  0x31   : > { %v1718_v5 = vshrl.u32 %v196_v4, 7  ;;  %v351_v40 = vld [vmem:[%s2204_s2] sm:$0x77] (%p230_p4) }
  0x32   : > { %v1075_v41 = vcombine.high (%p230_p4), %v351_v40, %v351_v40  ;;  %v1074_v42 = vcombine.low (%p230_p4), %v351_v40, %v351_v40 }
  0x33   : > { %v1721_v6 = vadd.s32 8, %v1718_v5  ;;  %v1724_v7 = vadd.s32 16, %v1718_v5  ;;  %v1727_v8 = vadd.s32 24, %v1718_v5  ;;  %v1730_v9 = vadd.s32 32, %v1718_v5 }
  0x34   : > { %v1733_v10 = vadd.s32 40, %v1718_v5  ;;  %v1736_v11 = vadd.s32 48, %v1718_v5  ;;  %v1739_v12 = vadd.s32 56, %v1718_v5  ;;  %v1742_v13 = vadd.s32 64, %v1718_v5  ;;  %391 = vmatprep.mubr.bf16.mxu0 (%p230_p4), %v1075_v41 }
  0x35   : > { %v1745_v14 = vadd.s32 72, %v1718_v5  ;;  %v1748_v15 = vadd.s32 80, %v1718_v5  ;;  %v1751_v16 = vadd.s32 88, %v1718_v5  ;;  %v1754_v17 = vadd.s32 96, %v1718_v5 }
  0x36   : > { %v1758_v18 = vadd.s32 104, %v1718_v5  ;;  %v1761_v19 = vadd.s32 112, %v1718_v5  ;;  %v1764_v20 = vadd.s32 120, %v1718_v5  ;;  %v1767_v21 = vadd.s32 128, %v1718_v5  ;;  %233 = sbr.rel (!%p230_p4) target bundleno = 294 (0x126), region = 66 }
  0x37   : > { %v1770_v22 = vadd.s32 136, %v1718_v5  ;;  %v1773_v23 = vadd.s32 144, %v1718_v5  ;;  %v1776_v24 = vadd.s32 152, %v1718_v5  ;;  %v1779_v25 = vadd.s32 160, %v1718_v5 }
  0x38   : > { %v1782_v26 = vadd.s32 168, %v1718_v5  ;;  %v1785_v27 = vadd.s32 176, %v1718_v5  ;;  %v1788_v28 = vadd.s32 184, %v1718_v5  ;;  %v1791_v29 = vadd.s32 192, %v1718_v5 }
  0x39   : > { %v1794_v30 = vadd.s32 200, %v1718_v5  ;;  %v1797_v31 = vadd.s32 208, %v1718_v5  ;;  %v1800_v32 = vadd.s32 216, %v1718_v5  ;;  %v1803_v33 = vadd.s32 224, %v1718_v5 }
  0x3a   : > { %v1806_v34 = vadd.s32 232, %v1718_v5  ;;  %v1809_v35 = vadd.s32 240, %v1718_v5  ;;  %v1812_v36 = vadd.s32 248, %v1718_v5  ;;  %vm253_vm2 = vcmp.eq.s32.totalorder (%p230_p4), %v1761_v19, %v1823_v38 }
  0x3b   : > { %vm254_vm3 = vcmp.eq.s32.totalorder %v1764_v20, %v1823_v38  ;;  %vm267_vm5 = vcmp.eq.s32.totalorder %v1803_v33, %v1823_v38  ;;  %vm251_vm7 = vcmp.eq.s32.totalorder %v1754_v17, %v1823_v38  ;;  %vm252_vm8 = vcmp.eq.s32.totalorder %v1758_v18, %v1823_v38 }
  0x3c   : > { %vm269_vm0 = vcmp.eq.s32.totalorder %v1809_v35, %v1823_v38  ;;  %vm270_vm1 = vcmp.eq.s32.totalorder %v1812_v36, %v1823_v38  ;;  %vm268_vm6 = vcmp.eq.s32.totalorder %v1806_v34, %v1823_v38  ;;  %vm1076_vm9 = vmpackc.low %vm254_vm3, %vm253_vm2  ;;  %vm265_vm10 = vcmp.eq.s32.totalorder %v1797_v31, %v1823_v38 }
  0x3d   : > { %vm1092_vm4 = vmpackc.low %vm270_vm1, %vm269_vm0  ;;  %vm266_vm11 = vcmp.eq.s32.totalorder %v1800_v32, %v1823_v38  ;;  %vm249_vm15 = vcmp.eq.s32.totalorder %v1748_v15, %v1823_v38  ;;  %vm250_vm0 = vcmp.eq.s32.totalorder %v1751_v16, %v1823_v38  ;;  %vm263_vm1 = vcmp.eq.s32.totalorder %v1791_v29, %v1823_v38 }
  0x3e   : > { %1322 = vmatprep.subr.msk.bf16.mxu0 %vm1092_vm4, %v1627_v39  ;;  %vm1094_vm12 = vmpackc.low %vm268_vm6, %vm267_vm5  ;;  %vm264_vm2 = vcmp.eq.s32.totalorder %v1794_v30, %v1823_v38  ;;  %vm247_vm5 = vcmp.eq.s32.totalorder %v1742_v13, %v1823_v38  ;;  %vm248_vm6 = vcmp.eq.s32.totalorder %v1745_v14, %v1823_v38 }
  0x3f   : > { %1323 = vmatpush3.bf16.msk.msra.mxu0 %vm1076_vm9, %v1627_v39  ;;  %vm1078_vm13 = vmpackc.low %vm252_vm8, %vm251_vm7  ;;  %vm261_vm7 = vcmp.eq.s32.totalorder %v1785_v27, %v1823_v38  ;;  %vm262_vm8 = vcmp.eq.s32.totalorder %v1788_v28, %v1823_v38 }
  0x40   : > { %1324 = vmatprep.subr.msk.bf16.mxu0 %vm1094_vm12, %v1627_v39  ;;  %vm1096_vm14 = vmpackc.low %vm266_vm11, %vm265_vm10  ;;  %vm245_vm11 = vcmp.eq.s32.totalorder %v1736_v11, %v1823_v38  ;;  %vm246_vm12 = vcmp.eq.s32.totalorder %v1739_v12, %v1823_v38 }
  0x41   : > { %vm1080_vm3 = vmpackc.low %vm250_vm0, %vm249_vm15 }
  0x42   : > { %vm1098_vm4 = vmpackc.low %vm264_vm2, %vm263_vm1  ;;  %vm243_vm1 = vcmp.eq.s32.totalorder %v1730_v9, %v1823_v38  ;;  %vm244_vm2 = vcmp.eq.s32.totalorder %v1733_v10, %v1823_v38 }
  0x43   : > { %1325 = vmatpush3.bf16.msk.msra.mxu0 %vm1078_vm13, %v1627_v39  ;;  %vm1082_vm9 = vmpackc.low %vm248_vm6, %vm247_vm5  ;;  %vm259_vm13 = vcmp.eq.s32.totalorder %v1779_v25, %v1823_v38 }
  0x44   : > { %1326 = vmatprep.subr.msk.bf16.mxu0 %vm1096_vm14, %v1627_v39  ;;  %vm1100_vm10 = vmpackc.low %vm262_vm8, %vm261_vm7  ;;  %vm260_vm14 = vcmp.eq.s32.totalorder %v1782_v26, %v1823_v38  ;;  %vm241_vm7 = vcmp.eq.s32.totalorder %v1724_v7, %v1823_v38  ;;  %vm242_vm8 = vcmp.eq.s32.totalorder %v1727_v8, %v1823_v38 }
  0x45   : > { %vm1084_vm15 = vmpackc.low %vm246_vm12, %vm245_vm11 }
  0x46   : > { %vm1102_vm0 = vmpackc.low %vm260_vm14, %vm259_vm13  ;;  %vm239_vm13 = vcmp.eq.s32.totalorder %v1718_v5, %v1823_v38  ;;  %vm240_vm14 = vcmp.eq.s32.totalorder %v1721_v6, %v1823_v38 }
  0x47   : > { %1327 = vmatpush3.bf16.msk.msra.mxu0 %vm1080_vm3, %v1627_v39  ;;  %vm257_vm3 = vcmp.eq.s32.totalorder %v1773_v23, %v1823_v38  ;;  %vm1086_vm5 = vmpackc.low %vm244_vm2, %vm243_vm1 }
  0x48   : > { %1328 = vmatprep.subr.msk.bf16.mxu0 %vm1098_vm4, %v1627_v39  ;;  %vm258_vm4 = vcmp.eq.s32.totalorder %v1776_v24, %v1823_v38  ;;  %vm1088_vm11 = vmpackc.low %vm242_vm8, %vm241_vm7 }
  0x49   : > { %vm1104_vm6 = vmpackc.low %vm258_vm4, %vm257_vm3 }
  0x4b   : > { %1329 = vmatpush3.bf16.msk.msra.mxu0 %vm1082_vm9, %v1627_v39  ;;  %vm255_vm9 = vcmp.eq.s32.totalorder %v1767_v21, %v1823_v38 }
  0x4c   : > { %1330 = vmatprep.subr.msk.bf16.mxu0 %vm1100_vm10, %v1627_v39  ;;  %vm256_vm10 = vcmp.eq.s32.totalorder %v1770_v22, %v1823_v38 }
  0x4d   : > { %vm1106_vm12 = vmpackc.low %vm256_vm10, %vm255_vm9 }
  0x4f   : > { %1331 = vmatpush3.bf16.msk.msra.mxu0 %vm1084_vm15, %v1627_v39  ;;  %vm1090_vm15 = vmpackc.low %vm240_vm14, %vm239_vm13 }
  0x50   : > { %1332 = vmatprep.subr.msk.bf16.mxu0 %vm1102_vm0, %v1627_v39 }
  0x53   : > { %1333 = vmatpush3.bf16.msk.msra.mxu0 %vm1086_vm5, %v1627_v39 }
  0x54   : > { %1334 = vmatprep.subr.msk.bf16.mxu0 %vm1104_vm6, %v1627_v39 }
  0x57   : > { %1335 = vmatpush3.bf16.msk.msra.mxu0 %vm1088_vm11, %v1627_v39 }
  0x58   : > { %1336 = vmatprep.subr.msk.bf16.mxu0 %vm1106_vm12, %v1627_v39 }
  0x5b   : > { %1337 = vmatpush3.bf16.msk.msra.mxu0 %vm1090_vm15, %v1627_v39 }
  0x5e   : > { %392 = vmatmul.mubr.bf16.vlgmr.msra.gmra.mxu0 %v1074_v42 }
 0x11e   : > { %v1338_v43 = vpop.f32.mrf.mxu0 }
 0x120   : > { %v1339_v44 = vpop.f32.mrf.mxu0 }
 0x121   : > { %v1340_v45 = vadd.f32 %v1339_v44, %v1338_v43 }
 0x122   : > { %v1341_v46 = vpop.f32.mrf.mxu0 }
 0x123   : > { %v401_v47 = vrot.slane %v1340_v45, 3 }
 0x124   : > { %v1342_v48 = vpop.f32.mrf.mxu0 }
 0x125   : > { %v403_v37 = vadd.f32 %v1340_v45, %v401_v47  }
 0x126 PF: > { %s1895_s14 = sld [smem:[#allocation3 + $0x1]]  ;;  %v1902_v51 = vmov 0   ;;  %v1612_v37 = vphi %v1818_v37, %v403_v37  }
 0x127   : > { %s1436_s15 = scalar_select %p230_p4, 0, 1 }
 0x129   : > { %v1412_v49 = vstv %s1436_s15 }
 0x12a   : > { %vm1413_vm0 = vcmp.ne.s32.totalorder %v1412_v49, 0 }
 0x12b   : > { %v1899_v50 = vsel %vm1413_vm0, 0.0, %v1612_v37 }
 0x12c   : > { %p410_p5 = scmp.ne.f32.partialorder %s1895_s14, 0.0 }
 0x12d   : > { %v1907_v52 = vld [vmem:[%s1815_s10 + $0x1] ss:$0 sm:$0xff] (%p410_p5)  ;;  %v1628_v53 = vmov (%p410_p5), 1.0|1.0   ;;  %v1143_v54 = vld [vmem:[%s2204_s2 + $0x8] sm:$0x77] (%p410_p5) }
 0x12e   : > { %413 = sbr.rel (!%p410_p5) target bundleno = 536 (0x218), region = 74  ;;  %vm450_vm1 = vcmp.eq.s32.totalorder (%p410_p5), %v1809_v35, %v1907_v52  ;;  %vm451_vm2 = vcmp.eq.s32.totalorder (%p410_p5), %v1812_v36, %v1907_v52  ;;  %vm434_vm3 = vcmp.eq.s32.totalorder (%p410_p5), %v1761_v19, %v1907_v52  ;;  %vm435_vm4 = vcmp.eq.s32.totalorder (%p410_p5), %v1764_v20, %v1907_v52 }
 0x12f   : > { %vm1162_vm5 = vmpackc.low (%p410_p5), %vm451_vm2, %vm450_vm1  ;;  %vm448_vm6 = vcmp.eq.s32.totalorder (%p410_p5), %v1803_v33, %v1907_v52  ;;  %vm449_vm7 = vcmp.eq.s32.totalorder (%p410_p5), %v1806_v34, %v1907_v52  ;;  %vm432_vm8 = vcmp.eq.s32.totalorder (%p410_p5), %v1754_v17, %v1907_v52  ;;  %vm433_vm9 = vcmp.eq.s32.totalorder (%p410_p5), %v1758_v18, %v1907_v52 }
 0x130   : > { %1344 = vmatprep.subr.msk.bf16.mxu0 (%p410_p5), %vm1162_vm5, %v1628_v53  ;;  %vm1146_vm10 = vmpackc.low (%p410_p5), %vm435_vm4, %vm434_vm3  ;;  %vm446_vm11 = vcmp.eq.s32.totalorder (%p410_p5), %v1797_v31, %v1907_v52  ;;  %vm447_vm12 = vcmp.eq.s32.totalorder (%p410_p5), %v1800_v32, %v1907_v52  ;;  %vm430_vm0 = vcmp.eq.s32.totalorder (%p410_p5), %v1748_v15, %v1907_v52  ;;  %vm431_vm1 = vcmp.eq.s32.totalorder (%p410_p5), %v1751_v16, %v1907_v52 }
 0x131   : > { %1345 = vmatpush3.bf16.msk.msra.mxu0 (%p410_p5), %vm1146_vm10, %v1628_v53  ;;  %vm1164_vm13 = vmpackc.low (%p410_p5), %vm449_vm7, %vm448_vm6  ;;  %vm444_vm2 = vcmp.eq.s32.totalorder (%p410_p5), %v1791_v29, %v1907_v52  ;;  %vm445_vm3 = vcmp.eq.s32.totalorder (%p410_p5), %v1794_v30, %v1907_v52  ;;  %v1145_v55 = vcombine.high (%p410_p5), %v1143_v54, %v1143_v54  ;;  %vm428_vm6 = vcmp.eq.s32.totalorder (%p410_p5), %v1742_v13, %v1907_v52 }
 0x132   : > { %1346 = vmatprep.subr.msk.bf16.mxu0 (%p410_p5), %vm1164_vm13, %v1628_v53  ;;  %vm1148_vm14 = vmpackc.low (%p410_p5), %vm433_vm9, %vm432_vm8  ;;  %vm429_vm7 = vcmp.eq.s32.totalorder (%p410_p5), %v1745_v14, %v1907_v52  ;;  %vm442_vm8 = vcmp.eq.s32.totalorder (%p410_p5), %v1785_v27, %v1907_v52  ;;  %vm443_vm9 = vcmp.eq.s32.totalorder (%p410_p5), %v1788_v28, %v1907_v52  ;;  %vm427_vm13 = vcmp.eq.s32.totalorder (%p410_p5), %v1739_v12, %v1907_v52 }
 0x133   : > { %vm1166_vm15 = vmpackc.low %vm447_vm12, %vm446_vm11  ;;  %573 = vmatprep.mubr.bf16.mxu0 %v1145_v55  ;;  %vm426_vm12 = vcmp.eq.s32.totalorder %v1736_v11, %v1907_v52  ;;  %v1144_v56 = vcombine.low %v1143_v54, %v1143_v54 }
 0x134   : > { %vm1150_vm4 = vmpackc.low %vm431_vm1, %vm430_vm0 }
 0x135   : > { %1347 = vmatpush3.bf16.msk.msra.mxu0 %vm1148_vm14, %v1628_v53  ;;  %vm1168_vm5 = vmpackc.low %vm445_vm3, %vm444_vm2  ;;  %vm440_vm14 = vcmp.eq.s32.totalorder %v1779_v25, %v1907_v52  ;;  %vm424_vm2 = vcmp.eq.s32.totalorder %v1730_v9, %v1907_v52  ;;  %vm425_vm3 = vcmp.eq.s32.totalorder %v1733_v10, %v1907_v52 }
 0x136   : > { %1348 = vmatprep.subr.msk.bf16.mxu0 %vm1166_vm15, %v1628_v53  ;;  %vm1152_vm10 = vmpackc.low %vm429_vm7, %vm428_vm6  ;;  %vm441_vm15 = vcmp.eq.s32.totalorder %v1782_v26, %v1907_v52 }
 0x137   : > { %vm1170_vm11 = vmpackc.low %vm443_vm9, %vm442_vm8  ;;  %vm422_vm8 = vcmp.eq.s32.totalorder %v1724_v7, %v1907_v52  ;;  %vm423_vm9 = vcmp.eq.s32.totalorder %v1727_v8, %v1907_v52 }
 0x138   : > { %vm1154_vm0 = vmpackc.low %vm427_vm13, %vm426_vm12 }
 0x139   : > { %1349 = vmatpush3.bf16.msk.msra.mxu0 %vm1150_vm4, %v1628_v53  ;;  %vm1172_vm1 = vmpackc.low %vm441_vm15, %vm440_vm14  ;;  %vm438_vm4 = vcmp.eq.s32.totalorder %v1773_v23, %v1907_v52  ;;  %vm420_vm14 = vcmp.eq.s32.totalorder %v1718_v5, %v1907_v52  ;;  %vm421_vm15 = vcmp.eq.s32.totalorder %v1721_v6, %v1907_v52 }
 0x13a   : > { %1350 = vmatprep.subr.msk.bf16.mxu0 %vm1168_vm5, %v1628_v53  ;;  %vm439_vm5 = vcmp.eq.s32.totalorder %v1776_v24, %v1907_v52  ;;  %vm1156_vm6 = vmpackc.low %vm425_vm3, %vm424_vm2 }
 0x13b   : > { %vm1174_vm7 = vmpackc.low %vm439_vm5, %vm438_vm4 }
 0x13c   : > { %vm1158_vm12 = vmpackc.low %vm423_vm9, %vm422_vm8 }
 0x13d   : > { %1351 = vmatpush3.bf16.msk.msra.mxu0 %vm1152_vm10, %v1628_v53  ;;  %vm436_vm10 = vcmp.eq.s32.totalorder %v1767_v21, %v1907_v52 }
 0x13e   : > { %1352 = vmatprep.subr.msk.bf16.mxu0 %vm1170_vm11, %v1628_v53  ;;  %vm437_vm11 = vcmp.eq.s32.totalorder %v1770_v22, %v1907_v52 }
 0x13f   : > { %vm1176_vm13 = vmpackc.low %vm437_vm11, %vm436_vm10 }
 0x141   : > { %1353 = vmatpush3.bf16.msk.msra.mxu0 %vm1154_vm0, %v1628_v53  ;;  %vm1160_vm0 = vmpackc.low %vm421_vm15, %vm420_vm14 }
 0x142   : > { %1354 = vmatprep.subr.msk.bf16.mxu0 %vm1172_vm1, %v1628_v53 }
 0x145   : > { %1355 = vmatpush3.bf16.msk.msra.mxu0 %vm1156_vm6, %v1628_v53 }
 0x146   : > { %1356 = vmatprep.subr.msk.bf16.mxu0 %vm1174_vm7, %v1628_v53 }
 0x149   : > { %1357 = vmatpush3.bf16.msk.msra.mxu0 %vm1158_vm12, %v1628_v53 }
 0x14a   : > { %1358 = vmatprep.subr.msk.bf16.mxu0 %vm1176_vm13, %v1628_v53 }
 0x14d   : > { %1359 = vmatpush3.bf16.msk.msra.mxu0 %vm1160_vm0, %v1628_v53 }
 0x150   : > { %574 = vmatmul.mubr.bf16.vlgmr.msra.gmra.mxu0 %v1144_v56 }
 0x210   : > { %v1360_v57 = vpop.f32.mrf.mxu0 }
 0x212   : > { %v1361_v58 = vpop.f32.mrf.mxu0 }
 0x213   : > { %v1362_v59 = vadd.f32 %v1361_v58, %v1360_v57 }
 0x214   : > { %v1363_v60 = vpop.f32.mrf.mxu0 }
 0x215   : > { %v581_v61 = vadd.f32 %v1899_v50, %v1362_v59  ;;  %v583_v62 = vrot.slane %v1362_v59, 3 }
 0x216   : > { %v1364_v63 = vpop.f32.mrf.mxu0 }
 0x217   : > { %v585_v51 = vadd.f32 %v583_v62, %v581_v61  }
 0x218 PF: > { %s1980_s23 = sld [smem:[#allocation3 + $0x2]]  ;;  %v1988_v2 = vmov 0   ;;  %v1616_v51 = vphi %v1902_v51, %v585_v51  }
 0x219   : > { %s1437_s24 = scalar_select %p410_p5, 0, 1 }
 0x21b   : > { %v1417_v0 = vstv %s1437_s24 }
 0x21c   : > { %vm1418_vm1 = vcmp.ne.s32.totalorder %v1417_v0, 0 }
 0x21d   : > { %v1985_v1 = vsel %vm1418_vm1, %v1899_v50, %v1616_v51 }
 0x21e   : > { %p592_p6 = scmp.ne.f32.partialorder %s1980_s23, 0.0 }
 0x21f   : > { %v1993_v3 = vld [vmem:[%s1815_s10 + $0x2] ss:$0 sm:$0xff] (%p592_p6)  ;;  %v1629_v4 = vmov (%p592_p6), 1.0|1.0   ;;  %v1213_v37 = vld [vmem:[%s2204_s2 + $0x10] sm:$0x77] (%p592_p6) }
 0x220   : > { %595 = sbr.rel (!%p592_p6) target bundleno = 778 (0x30a), region = 82  ;;  %vm632_vm2 = vcmp.eq.s32.totalorder (%p592_p6), %v1809_v35, %v1993_v3  ;;  %vm633_vm3 = vcmp.eq.s32.totalorder (%p592_p6), %v1812_v36, %v1993_v3  ;;  %vm616_vm4 = vcmp.eq.s32.totalorder (%p592_p6), %v1761_v19, %v1993_v3  ;;  %vm617_vm5 = vcmp.eq.s32.totalorder (%p592_p6), %v1764_v20, %v1993_v3 }
 0x221   : > { %vm1232_vm6 = vmpackc.low (%p592_p6), %vm633_vm3, %vm632_vm2  ;;  %vm630_vm7 = vcmp.eq.s32.totalorder (%p592_p6), %v1803_v33, %v1993_v3  ;;  %vm631_vm8 = vcmp.eq.s32.totalorder (%p592_p6), %v1806_v34, %v1993_v3  ;;  %vm614_vm9 = vcmp.eq.s32.totalorder (%p592_p6), %v1754_v17, %v1993_v3  ;;  %vm615_vm10 = vcmp.eq.s32.totalorder (%p592_p6), %v1758_v18, %v1993_v3 }
 0x222   : > { %1366 = vmatprep.subr.msk.bf16.mxu0 (%p592_p6), %vm1232_vm6, %v1629_v4  ;;  %vm1216_vm11 = vmpackc.low (%p592_p6), %vm617_vm5, %vm616_vm4  ;;  %vm628_vm12 = vcmp.eq.s32.totalorder (%p592_p6), %v1797_v31, %v1993_v3  ;;  %vm629_vm13 = vcmp.eq.s32.totalorder (%p592_p6), %v1800_v32, %v1993_v3  ;;  %vm612_vm1 = vcmp.eq.s32.totalorder (%p592_p6), %v1748_v15, %v1993_v3  ;;  %vm613_vm2 = vcmp.eq.s32.totalorder (%p592_p6), %v1751_v16, %v1993_v3 }
 0x223   : > { %1367 = vmatpush3.bf16.msk.msra.mxu0 (%p592_p6), %vm1216_vm11, %v1629_v4  ;;  %vm1234_vm14 = vmpackc.low (%p592_p6), %vm631_vm8, %vm630_vm7  ;;  %vm626_vm3 = vcmp.eq.s32.totalorder (%p592_p6), %v1791_v29, %v1993_v3  ;;  %vm627_vm4 = vcmp.eq.s32.totalorder (%p592_p6), %v1794_v30, %v1993_v3  ;;  %v1215_v38 = vcombine.high (%p592_p6), %v1213_v37, %v1213_v37  ;;  %vm610_vm7 = vcmp.eq.s32.totalorder (%p592_p6), %v1742_v13, %v1993_v3 }
 0x224   : > { %1368 = vmatprep.subr.msk.bf16.mxu0 (%p592_p6), %vm1234_vm14, %v1629_v4  ;;  %vm1218_vm15 = vmpackc.low (%p592_p6), %vm615_vm10, %vm614_vm9  ;;  %vm611_vm8 = vcmp.eq.s32.totalorder (%p592_p6), %v1745_v14, %v1993_v3  ;;  %vm624_vm9 = vcmp.eq.s32.totalorder (%p592_p6), %v1785_v27, %v1993_v3  ;;  %vm625_vm10 = vcmp.eq.s32.totalorder (%p592_p6), %v1788_v28, %v1993_v3  ;;  %vm609_vm14 = vcmp.eq.s32.totalorder (%p592_p6), %v1739_v12, %v1993_v3 }
 0x225   : > { %vm1236_vm0 = vmpackc.low %vm629_vm13, %vm628_vm12  ;;  %755 = vmatprep.mubr.bf16.mxu0 %v1215_v38  ;;  %vm608_vm13 = vcmp.eq.s32.totalorder %v1736_v11, %v1993_v3  ;;  %v1214_v39 = vcombine.low %v1213_v37, %v1213_v37 }
 0x226   : > { %vm1220_vm5 = vmpackc.low %vm613_vm2, %vm612_vm1 }
 0x227   : > { %1369 = vmatpush3.bf16.msk.msra.mxu0 %vm1218_vm15, %v1629_v4  ;;  %vm1238_vm6 = vmpackc.low %vm627_vm4, %vm626_vm3  ;;  %vm622_vm15 = vcmp.eq.s32.totalorder %v1779_v25, %v1993_v3  ;;  %vm606_vm3 = vcmp.eq.s32.totalorder %v1730_v9, %v1993_v3  ;;  %vm607_vm4 = vcmp.eq.s32.totalorder %v1733_v10, %v1993_v3 }
 0x228   : > { %1370 = vmatprep.subr.msk.bf16.mxu0 %vm1236_vm0, %v1629_v4  ;;  %vm1222_vm11 = vmpackc.low %vm611_vm8, %vm610_vm7  ;;  %vm623_vm0 = vcmp.eq.s32.totalorder %v1782_v26, %v1993_v3 }
 0x229   : > { %vm1240_vm12 = vmpackc.low %vm625_vm10, %vm624_vm9  ;;  %vm604_vm9 = vcmp.eq.s32.totalorder %v1724_v7, %v1993_v3  ;;  %vm605_vm10 = vcmp.eq.s32.totalorder %v1727_v8, %v1993_v3 }
 0x22a   : > { %vm1224_vm1 = vmpackc.low %vm609_vm14, %vm608_vm13 }
 0x22b   : > { %1371 = vmatpush3.bf16.msk.msra.mxu0 %vm1220_vm5, %v1629_v4  ;;  %vm1242_vm2 = vmpackc.low %vm623_vm0, %vm622_vm15  ;;  %vm620_vm5 = vcmp.eq.s32.totalorder %v1773_v23, %v1993_v3  ;;  %vm602_vm15 = vcmp.eq.s32.totalorder %v1718_v5, %v1993_v3  ;;  %vm603_vm0 = vcmp.eq.s32.totalorder %v1721_v6, %v1993_v3 }
 0x22c   : > { %1372 = vmatprep.subr.msk.bf16.mxu0 %vm1238_vm6, %v1629_v4  ;;  %vm621_vm6 = vcmp.eq.s32.totalorder %v1776_v24, %v1993_v3  ;;  %vm1226_vm7 = vmpackc.low %vm607_vm4, %vm606_vm3 }
 0x22d   : > { %vm1244_vm8 = vmpackc.low %vm621_vm6, %vm620_vm5 }
 0x22e   : > { %vm1228_vm13 = vmpackc.low %vm605_vm10, %vm604_vm9 }
 0x22f   : > { %1373 = vmatpush3.bf16.msk.msra.mxu0 %vm1222_vm11, %v1629_v4  ;;  %vm618_vm11 = vcmp.eq.s32.totalorder %v1767_v21, %v1993_v3 }
 0x230   : > { %1374 = vmatprep.subr.msk.bf16.mxu0 %vm1240_vm12, %v1629_v4  ;;  %vm619_vm12 = vcmp.eq.s32.totalorder %v1770_v22, %v1993_v3 }
 0x231   : > { %vm1246_vm14 = vmpackc.low %vm619_vm12, %vm618_vm11 }
 0x233   : > { %1375 = vmatpush3.bf16.msk.msra.mxu0 %vm1224_vm1, %v1629_v4  ;;  %vm1230_vm1 = vmpackc.low %vm603_vm0, %vm602_vm15 }
 0x234   : > { %1376 = vmatprep.subr.msk.bf16.mxu0 %vm1242_vm2, %v1629_v4 }
 0x237   : > { %1377 = vmatpush3.bf16.msk.msra.mxu0 %vm1226_vm7, %v1629_v4 }
 0x238   : > { %1378 = vmatprep.subr.msk.bf16.mxu0 %vm1244_vm8, %v1629_v4 }
 0x23b   : > { %1379 = vmatpush3.bf16.msk.msra.mxu0 %vm1228_vm13, %v1629_v4 }
 0x23c   : > { %1380 = vmatprep.subr.msk.bf16.mxu0 %vm1246_vm14, %v1629_v4 }
 0x23f   : > { %1381 = vmatpush3.bf16.msk.msra.mxu0 %vm1230_vm1, %v1629_v4 }
 0x242   : > { %756 = vmatmul.mubr.bf16.vlgmr.msra.gmra.mxu0 %v1214_v39 }
 0x302   : > { %v1382_v40 = vpop.f32.mrf.mxu0 }
 0x304   : > { %v1383_v41 = vpop.f32.mrf.mxu0 }
 0x305   : > { %v1384_v42 = vadd.f32 %v1383_v41, %v1382_v40 }
 0x306   : > { %v1385_v43 = vpop.f32.mrf.mxu0 }
 0x307   : > { %v763_v44 = vadd.f32 %v1985_v1, %v1384_v42  ;;  %v765_v45 = vrot.slane %v1384_v42, 3 }
 0x308   : > { %v1386_v46 = vpop.f32.mrf.mxu0 }
 0x309   : > { %v767_v2 = vadd.f32 %v765_v45, %v763_v44  }
 0x30a PF: > { %s2066_s30 = sld [smem:[#allocation3 + $0x3]]  ;;  %v2074_v49 = vmov 0   ;;  %v1620_v2 = vphi %v1988_v2, %v767_v2  }
 0x30b   : > { %s1438_s4 = scalar_select %p592_p6, 0, 1 }
 0x30d   : > { %v1422_v47 = vstv %s1438_s4 }
 0x30e   : > { %vm1423_vm2 = vcmp.ne.s32.totalorder %v1422_v47, 0 }
 0x30f   : > { %v2071_v48 = vsel %vm1423_vm2, %v1985_v1, %v1620_v2 }
 0x310   : > { %p774_p7 = scmp.ne.f32.partialorder %s2066_s30, 0.0 }
 0x311   : > { %v2079_v50 = vld [vmem:[%s1815_s10 + $0x3] ss:$0 sm:$0xff] (%p774_p7) }
 0x312   : > { %777 = sbr.rel (!%p774_p7) target bundleno = 1021 (0x3fd), region = 90  ;;  %vm814_vm3 = vcmp.eq.s32.totalorder (%p774_p7), %v1809_v35, %v2079_v50  ;;  %vm815_vm4 = vcmp.eq.s32.totalorder (%p774_p7), %v1812_v36, %v2079_v50  ;;  %vm798_vm5 = vcmp.eq.s32.totalorder (%p774_p7), %v1761_v19, %v2079_v50  ;;  %vm799_vm6 = vcmp.eq.s32.totalorder (%p774_p7), %v1764_v20, %v2079_v50 }
 0x313   : > { %vm1302_vm7 = vmpackc.low (%p774_p7), %vm815_vm4, %vm814_vm3  ;;  %vm812_vm8 = vcmp.eq.s32.totalorder (%p774_p7), %v1803_v33, %v2079_v50  ;;  %vm813_vm9 = vcmp.eq.s32.totalorder (%p774_p7), %v1806_v34, %v2079_v50  ;;  %vm796_vm10 = vcmp.eq.s32.totalorder (%p774_p7), %v1754_v17, %v2079_v50  ;;  %vm797_vm11 = vcmp.eq.s32.totalorder (%p774_p7), %v1758_v18, %v2079_v50  ;;  %v1283_v17 = vld [vmem:[%s2204_s2 + $0x18] sm:$0x77] (%p774_p7) }
 0x314   : > { %v1630_v35 = vmov (%p774_p7), 1.0|1.0   ;;  %vm1286_vm12 = vmpackc.low (%p774_p7), %vm799_vm6, %vm798_vm5  ;;  %vm810_vm13 = vcmp.eq.s32.totalorder (%p774_p7), %v1797_v31, %v2079_v50  ;;  %vm811_vm14 = vcmp.eq.s32.totalorder (%p774_p7), %v1800_v32, %v2079_v50  ;;  %vm794_vm2 = vcmp.eq.s32.totalorder (%p774_p7), %v1748_v15, %v2079_v50 }
 0x315   : > { %1388 = vmatprep.subr.msk.bf16.mxu0 (%p774_p7), %vm1302_vm7, %v1630_v35  ;;  %vm1304_vm15 = vmpackc.low (%p774_p7), %vm813_vm9, %vm812_vm8  ;;  %vm795_vm3 = vcmp.eq.s32.totalorder (%p774_p7), %v1751_v16, %v2079_v50  ;;  %vm808_vm4 = vcmp.eq.s32.totalorder (%p774_p7), %v1791_v29, %v2079_v50  ;;  %vm809_vm5 = vcmp.eq.s32.totalorder (%p774_p7), %v1794_v30, %v2079_v50  ;;  %v1285_v18 = vcombine.high (%p774_p7), %v1283_v17, %v1283_v17 }
 0x316   : > { %1389 = vmatpush3.bf16.msk.msra.mxu0 (%p774_p7), %vm1286_vm12, %v1630_v35  ;;  %vm1288_vm0 = vmpackc.low (%p774_p7), %vm797_vm11, %vm796_vm10  ;;  %vm792_vm8 = vcmp.eq.s32.totalorder (%p774_p7), %v1742_v13, %v2079_v50  ;;  %vm793_vm9 = vcmp.eq.s32.totalorder (%p774_p7), %v1745_v14, %v2079_v50  ;;  %vm806_vm10 = vcmp.eq.s32.totalorder (%p774_p7), %v1785_v27, %v2079_v50  ;;  %vm807_vm11 = vcmp.eq.s32.totalorder (%p774_p7), %v1788_v28, %v2079_v50 }
 0x317   : > { %1390 = vmatprep.subr.msk.bf16.mxu0 %vm1304_vm15, %v1630_v35  ;;  %vm1306_vm1 = vmpackc.low %vm811_vm14, %vm810_vm13  ;;  %937 = vmatprep.mubr.bf16.mxu0 %v1285_v18  ;;  %vm790_vm14 = vcmp.eq.s32.totalorder %v1736_v11, %v2079_v50  ;;  %vm791_vm15 = vcmp.eq.s32.totalorder %v1739_v12, %v2079_v50 }
 0x318   : > { %vm1290_vm6 = vmpackc.low %vm795_vm3, %vm794_vm2 }
 0x319   : > { %vm1308_vm7 = vmpackc.low %vm809_vm5, %vm808_vm4  ;;  %vm788_vm4 = vcmp.eq.s32.totalorder %v1730_v9, %v2079_v50  ;;  %vm789_vm5 = vcmp.eq.s32.totalorder %v1733_v10, %v2079_v50 }
 0x31a   : > { %1391 = vmatpush3.bf16.msk.msra.mxu0 %vm1288_vm0, %v1630_v35  ;;  %vm1292_vm12 = vmpackc.low %vm793_vm9, %vm792_vm8  ;;  %vm804_vm0 = vcmp.eq.s32.totalorder %v1779_v25, %v2079_v50 }
 0x31b   : > { %1392 = vmatprep.subr.msk.bf16.mxu0 %vm1306_vm1, %v1630_v35  ;;  %vm1310_vm13 = vmpackc.low %vm807_vm11, %vm806_vm10  ;;  %vm805_vm1 = vcmp.eq.s32.totalorder %v1782_v26, %v2079_v50  ;;  %vm786_vm10 = vcmp.eq.s32.totalorder %v1724_v7, %v2079_v50  ;;  %vm787_vm11 = vcmp.eq.s32.totalorder %v1727_v8, %v2079_v50  ;;  %v1284_v7 = vcombine.low %v1283_v17, %v1283_v17 }
 0x31c   : > { %vm1294_vm2 = vmpackc.low %vm791_vm15, %vm790_vm14 }
 0x31d   : > { %vm1312_vm3 = vmpackc.low %vm805_vm1, %vm804_vm0  ;;  %vm784_vm0 = vcmp.eq.s32.totalorder %v1718_v5, %v2079_v50  ;;  %vm785_vm1 = vcmp.eq.s32.totalorder %v1721_v6, %v2079_v50 }
 0x31e   : > { %1393 = vmatpush3.bf16.msk.msra.mxu0 %vm1290_vm6, %v1630_v35  ;;  %vm802_vm6 = vcmp.eq.s32.totalorder %v1773_v23, %v2079_v50  ;;  %vm1296_vm8 = vmpackc.low %vm789_vm5, %vm788_vm4 }
 0x31f   : > { %1394 = vmatprep.subr.msk.bf16.mxu0 %vm1308_vm7, %v1630_v35  ;;  %vm803_vm7 = vcmp.eq.s32.totalorder %v1776_v24, %v2079_v50  ;;  %vm1298_vm14 = vmpackc.low %vm787_vm11, %vm786_vm10 }
 0x320   : > { %vm1314_vm9 = vmpackc.low %vm803_vm7, %vm802_vm6 }
 0x322   : > { %1395 = vmatpush3.bf16.msk.msra.mxu0 %vm1292_vm12, %v1630_v35  ;;  %vm800_vm12 = vcmp.eq.s32.totalorder %v1767_v21, %v2079_v50 }
 0x323   : > { %1396 = vmatprep.subr.msk.bf16.mxu0 %vm1310_vm13, %v1630_v35  ;;  %vm801_vm13 = vcmp.eq.s32.totalorder %v1770_v22, %v2079_v50 }
 0x324   : > { %vm1316_vm15 = vmpackc.low %vm801_vm13, %vm800_vm12 }
 0x326   : > { %1397 = vmatpush3.bf16.msk.msra.mxu0 %vm1294_vm2, %v1630_v35  ;;  %vm1300_vm2 = vmpackc.low %vm785_vm1, %vm784_vm0 }
 0x327   : > { %1398 = vmatprep.subr.msk.bf16.mxu0 %vm1312_vm3, %v1630_v35 }
 0x32a   : > { %1399 = vmatpush3.bf16.msk.msra.mxu0 %vm1296_vm8, %v1630_v35 }
 0x32b   : > { %1400 = vmatprep.subr.msk.bf16.mxu0 %vm1314_vm9, %v1630_v35 }
 0x32e   : > { %1401 = vmatpush3.bf16.msk.msra.mxu0 %vm1298_vm14, %v1630_v35 }
 0x32f   : > { %1402 = vmatprep.subr.msk.bf16.mxu0 %vm1316_vm15, %v1630_v35 }
 0x332   : > { %1403 = vmatpush3.bf16.msk.msra.mxu0 %vm1300_vm2, %v1630_v35 }
 0x335   : > { %938 = vmatmul.mubr.bf16.vlgmr.msra.gmra.mxu0 %v1284_v7 }
 0x3f5   : > { %v1404_v8 = vpop.f32.mrf.mxu0 }
 0x3f7   : > { %v1405_v9 = vpop.f32.mrf.mxu0 }
 0x3f8   : > { %v1406_v10 = vadd.f32 %v1405_v9, %v1404_v8 }
 0x3f9   : > { %v1407_v11 = vpop.f32.mrf.mxu0 }
 0x3fa   : > { %v945_v12 = vadd.f32 %v2071_v48, %v1406_v10  ;;  %v947_v13 = vrot.slane %v1406_v10, 3 }
 0x3fb   : > { %v1408_v14 = vpop.f32.mrf.mxu0 }
 0x3fc   : > { %v949_v49 = vadd.f32 %v947_v13, %v945_v12  }
 0x3fd PF: > { %s1439_s8 = scalar_select %p774_p7, 0, 1  ;;  %v1624_v49 = vphi %v2074_v49, %v949_v49  }
 0x3fe   : > { %s1319_s10 = sshll.u32 %s1033_s20, 6  ;;  %s970_s12 = sshll.u32 %s194_s11, 4  ;;  %s971_s12 = int_to_ptr.vmem [resolvable:$true] %s970_s12 }
 0x3ff   : > { %v1427_v5 = vstv %s1439_s8  ;;  %s2161_s15 = scalar_lea.hbm %s2205_s3, %s1319_s10  ;;  %s957_s16 = scalar_lea.sflag [#allocation6], %s174_s7 }
 0x400   : > { %vm1428_vm3 = vcmp.ne.s32.totalorder %v1427_v5, 0  ;;  %s1530_s21 = scalar_lea.vmem %s971_s12, 64  ;;  %s1631_s20 = smov [#allocation5]  }
 0x401   : > { %v1429_v6 = vsel %vm1428_vm3, %v2071_v48, %v1624_v49  ;;  %p1531_p8 = scmp.ne.s32.totalorder %s971_s12, %s1530_s21  ;;  %s1534_s23 = sshll.u32 %s1631_s20, 4  ;;  %s1535_s23 = int_to_ptr.vmem [resolvable:$false] %s1534_s23 }
 0x402   : > { %955 = vst [vmem:[%s194_s11] sm:$0x7] %v1429_v6  ;;  %s1536_s24 = scalar_lea.vmem %s1535_s23, 128  ;;  %p1537_p12 = scmp.lt.s32.totalorder %s971_s12, %s1535_s23 }
 0x403   : > { %p1532_p9 = pnand %p1531_p8, %p1693_p11  ;;  %p1538_p1 = scmp.lt.s32.totalorder %s1536_s24, %s1530_s21 }
 0x405   : > { %p1533_p10 = pneg %p1532_p9  ;;  %p1539_p2 = por %p1538_p1, %p1537_p12 }
 0x407   : > { %p1540_p3 = pnand %p1539_p2, %p1533_p10 }
 0x409   : > { %1543 = shalt.err (!%p1540_p3)
}
 0x40a   : > { %s1544_s9 = scalar_lea.hbm %s2161_s15, 64  ;;  %s1548_s28 = scalar_lea.hbm %s2205_s3, 128 }
 0x40b   : > { %p1545_p4 = scmp.ne.s32.totalorder %s2161_s15, %s1544_s9  ;;  %p1549_p7 = scmp.lt.s32.totalorder %s2161_s15, %s2205_s3 }
 0x40c   : > { %p1550_p8 = scmp.lt.s32.totalorder %s1548_s28, %s1544_s9 }
 0x40d   : > { %p1546_p5 = pnand %p1545_p4, %p1693_p11 }
 0x40e   : > { %p1551_p9 = por %p1550_p8, %p1549_p7 }
 0x40f   : > { %p1547_p6 = pneg %p1546_p5 }
 0x411   : > { %p1552_p10 = pnand %p1551_p9, %p1547_p6 }
 0x413   : > { %1555 = shalt.err (!%p1552_p10)
}
 0x414   : > { %1430 = dma.vmem_to_hbm [thread:$0]  (%p1693_p11), %s971_s12, 64, %s2161_s15, %s957_s16  }
 0x415 PF: > { %s982_s4 = sand.u32 1, %s1596_s17   ;;  %p1433_p12 = pnand %p1036_p0, %p1697_p13 }
 0x416   : > { %s983_s5 = scalar_lea.sflag [#allocation6], %s982_s4 }
 0x417   : > { %p1434_p1 = pneg %p1433_p12 }
 0x419   : > { %1591 = dma.done.wait (%p1434_p1), %s983_s5, 64  }
 0x41a   : > { %1593 = vsyncadd (%p1434_p1), %s983_s5, 4294967232  ;;  %p19_p2 = scmp.ge.s32.totalorder %s1678_s22, 4   ;;  %s2208_s17 = smov %s1600_s18 }
 0x41b   : > { %s2209_s18 = smov %s1604_s0  ;;  %s2210_s0 = smov %s1691_s25 }
 0x41c   : > { %s2211_s19 = smov %s1678_s22  ;;  %21 = sbr.rel (!%p19_p2) target bundleno = 18 (0x12), region = 140 }
 0x421   :  { %988 = vsyncpa [#allocation6], 1 }
 0x422   :  { %990 = vsyncpa [#allocation6 + $0x1], 1 }

</bundles_post_ra>
